<compile_context>
chip_gen: v6e
topology: v6e:2x2x1
jax: 0.10.0
libtpu: 0.0.40
codegen_flags: <defaults>
</compile_context>

<pallas_src>
import functools

import jax
import jax.numpy as jnp
from jax.experimental import pallas as pl
from jax.experimental.pallas import tpu as pltpu

CONDS = 6
TARGETS = 3
IN_DIM = TARGETS + CONDS   # 9
IN_PAD = 16                # feature dim zero-padded for clean MXU/sublane layout
HID = 128
OUT_DIM = TARGETS          # 3


def _mlp_kernel(x_ref, w1t_ref, b1_ref, w2t_ref, b2_ref, w3t_ref, b3_ref, o_ref):
    # x_ref: (IN_PAD, TM) f32, batch on the 128-lane axis (lane-dense).
    x = x_ref[...].astype(jnp.bfloat16)

    # Layer 1: Linear(9 -> 128) + ReLU on the MXU (bf16 operands, f32 acc).
    h1 = jnp.dot(w1t_ref[...], x, preferred_element_type=jnp.float32)   # (HID, TM)
    h1 = jnp.maximum(h1 + b1_ref[...], 0.0).astype(jnp.bfloat16)

    # Layer 2: Linear(128 -> 128) + ReLU.  The resident weight matrix is the
    # LHS so the constant operand (not the per-tile activation) is stationed.
    h2 = jnp.dot(w2t_ref[...], h1, preferred_element_type=jnp.float32)  # (HID, TM)
    h2 = jnp.maximum(h2 + b2_ref[...], 0.0).astype(jnp.bfloat16)

    # Layer 3: Linear(128 -> 3).
    out = jnp.dot(w3t_ref[...], h2, preferred_element_type=jnp.float32)  # (OUT, TM)
    o_ref[...] = (out + b3_ref[...]).astype(o_ref.dtype)


def prepare_params(params):
    """PyTorch-style (in,out) weights / (1,out) biases -> kernel layout."""
    w1, b1, w2, b2, w3, b3 = params
    w1t = jnp.pad(jnp.asarray(w1.T, jnp.bfloat16),
                  ((0, 0), (0, IN_PAD - IN_DIM)))              # (HID, IN_PAD) bf16
    return (
        w1t,
        jnp.asarray(b1.T, jnp.float32),                        # (HID, 1)
        jnp.asarray(w2.T, jnp.bfloat16),                       # (HID, HID) bf16
        jnp.asarray(b2.T, jnp.float32),                        # (HID, 1)
        jnp.asarray(w3.T, jnp.bfloat16),                       # (OUT_DIM, HID) bf16
        jnp.asarray(b3.T, jnp.float32),                        # (OUT_DIM, 1)
    )


@functools.partial(jax.jit, static_argnames=("block_batch",))
def generator_forward(x, kparams, *, block_batch=4096):
    """x: (B, 9) float32 -> (B, 3) float32."""
    w1t, b1, w2t, b2, w3t, b3 = kparams
    B = x.shape[0]

    # Batch tile: multiple of 128 lanes, capped at block_batch (4096 default
    # fits every generation's scoped-VMEM default).
    block_batch = max(128, (block_batch // 128) * 128)
    b128 = pl.cdiv(B, 128) * 128
    tm = min(block_batch, b128)
    if b128 >= 2 * 128:
        # Keep >= 2 grid steps so ("parallel",) can shard across both v7x TCs.
        tm = min(tm, pl.cdiv(pl.cdiv(b128, 2), 128) * 128)
    b_pad = pl.cdiv(B, tm) * tm
    grid = (b_pad // tm,)

    # Lane-dense, feature-major input slab (IN_PAD, b_pad): single fused
    # pad + transpose (no zeros+dynamic-update extra HBM pass).
    x_t = jnp.pad(x.astype(jnp.float32),
                  ((0, b_pad - B), (0, IN_PAD - IN_DIM))).T

    def resident(arr):   # weights/biases: same block every grid step
        return pl.BlockSpec(arr.shape, lambda i: (0, 0))

    flops = 2 * b_pad * (IN_DIM * HID + HID * HID + HID * OUT_DIM)
    bytes_accessed = (
        b_pad * IN_PAD * 4 + b_pad * OUT_DIM * 4
        + HID * IN_PAD * 2 + HID * 4
        + HID * HID * 2 + HID * 4
        + OUT_DIM * HID * 2 + OUT_DIM * 4
    )

    out_t = pl.pallas_call(
        _mlp_kernel,
        out_shape=jax.ShapeDtypeStruct((OUT_DIM, b_pad), jnp.float32),
        grid=grid,
        in_specs=[
            pl.BlockSpec((IN_PAD, tm), lambda i: (0, i)),   # x tile, batch on lanes
            resident(w1t), resident(b1),
            resident(w2t), resident(b2),
            resident(w3t), resident(b3),
        ],
        out_specs=pl.BlockSpec((OUT_DIM, tm), lambda i: (0, i)),
        compiler_params=pltpu.CompilerParams(
            dimension_semantics=("parallel",),              # megacore on v7x
        ),
        cost_estimate=pl.CostEstimate(
            flops=flops, transcendentals=0, bytes_accessed=bytes_accessed),
    )(x_t, w1t, b1, w2t, b2, w3t, b3)

    return out_t[:, :B].T   # back to (B, OUT_DIM)


def init_params(key):
    """Deterministic init mimicking PyTorch Linear default: U(-1/sqrt(fan_in), +)."""
    ks = jax.random.split(key, 6)

    def linear(kw, kb, fan_in, fan_out):
        bound = 1.0 / jnp.sqrt(jnp.float32(fan_in))
        w = jax.random.uniform(kw, (fan_in, fan_out), jnp.float32, -bound, bound)
        b = jax.random.uniform(kb, (1, fan_out), jnp.float32, -bound, bound)
        return w, b

    w1, b1 = linear(ks[0], ks[1], IN_DIM, HID)
    w2, b2 = linear(ks[2], ks[3], HID, HID)
    w3, b3 = linear(ks[4], ks[5], HID, OUT_DIM)
    return (w1, b1, w2, b2, w3, b3)


def generator_ref(x, params):
    """Plain-JAX f32 reference for correctness checking."""
    w1, b1, w2, b2, w3, b3 = params
    h1 = jnp.maximum(x @ w1 + b1, 0.0)
    h2 = jnp.maximum(h1 @ w2 + b2, 0.0)
    return h2 @ w3 + b3


if __name__ == "__main__":
    key = jax.random.PRNGKey(0)
    k_params, k_x, k_x2 = jax.random.split(key, 3)

    params = init_params(k_params)
    kparams = prepare_params(params)

    # Small batch of generator inputs: concat([targets(3), conds(6)]) -> 9 features.
    x = jax.random.normal(k_x, (8, IN_DIM), dtype=jnp.float32)
    out = jax.block_until_ready(generator_forward(x, kparams))
    ref = generator_ref(x, params)
    assert out.shape == (8, OUT_DIM), out.shape
    # bf16 MXU operands (f32 accumulation) -> relaxed tolerance vs f32 reference.
    assert jnp.allclose(out, ref, atol=2e-2, rtol=2e-2), "mismatch vs reference"

    # Multi-tile + batch-padding path, default tile (grid >= 2, v7x megacore path).
    x2 = jax.random.normal(k_x2, (300, IN_DIM), dtype=jnp.float32)
    out2 = jax.block_until_ready(generator_forward(x2, kparams))
    ref2 = generator_ref(x2, params)
    assert out2.shape == (300, OUT_DIM), out2.shape
    assert jnp.allclose(out2, ref2, atol=2e-2, rtol=2e-2), "mismatch vs reference (tiled)"

    # Small explicit tile to exercise a >2-step grid with a ragged last tile.
    out3 = jax.block_until_ready(generator_forward(x2, kparams, block_batch=128))
    assert out3.shape == (300, OUT_DIM), out3.shape
    assert jnp.allclose(out3, ref2, atol=2e-2, rtol=2e-2), "mismatch vs reference (tm=128)"

    print("KERNEL_OK")
</pallas_src>

<mosaic_0001>
module attributes {stable_mosaic.version = 11 : i64} {
  func.func @_mlp_kernel(%arg0: i32, %arg1: memref<16x128xf32, #tpu.memory_space<vmem>>, %arg2: memref<128x16xbf16, #tpu.memory_space<vmem>>, %arg3: memref<128x1xf32, #tpu.memory_space<vmem>>, %arg4: memref<128x128xbf16, #tpu.memory_space<vmem>>, %arg5: memref<128x1xf32, #tpu.memory_space<vmem>>, %arg6: memref<3x128xbf16, #tpu.memory_space<vmem>>, %arg7: memref<3x1xf32, #tpu.memory_space<vmem>>, %arg8: memref<3x128xf32, #tpu.memory_space<vmem>>) attributes {dimension_semantics = [#tpu.dimension_semantics<parallel>], iteration_bounds = array<i64: 1>, scalar_prefetch = 0 : i64, scratch_operands = 0 : i64, tpu.core_type = #tpu.core_type<tc>, window_params = [{transform_indices = @transform_0, window_bounds = array<i64: 16, 128>}, {pipeline_mode = #tpu.pipeline_mode<synchronous>, transform_indices = @transform_1, window_bounds = array<i64: 128, 16>}, {pipeline_mode = #tpu.pipeline_mode<synchronous>, transform_indices = @transform_2, window_bounds = array<i64: 128, 1>}, {pipeline_mode = #tpu.pipeline_mode<synchronous>, transform_indices = @transform_3, window_bounds = array<i64: 128, 128>}, {pipeline_mode = #tpu.pipeline_mode<synchronous>, transform_indices = @transform_4, window_bounds = array<i64: 128, 1>}, {pipeline_mode = #tpu.pipeline_mode<synchronous>, transform_indices = @transform_5, window_bounds = array<i64: 3, 128>}, {pipeline_mode = #tpu.pipeline_mode<synchronous>, transform_indices = @transform_6, window_bounds = array<i64: 3, 1>}, {transform_indices = @transform_7, window_bounds = array<i64: 3, 128>}]} {
    %c0 = arith.constant 0 : index
    %c0_0 = arith.constant 0 : index
    %0 = vector.load %arg1[%c0, %c0_0] : memref<16x128xf32, #tpu.memory_space<vmem>>, vector<16x128xf32>
    %1 = arith.truncf %0 : vector<16x128xf32> to vector<16x128xbf16>
    %c0_1 = arith.constant 0 : index
    %c0_2 = arith.constant 0 : index
    %2 = vector.load %arg2[%c0_1, %c0_2] : memref<128x16xbf16, #tpu.memory_space<vmem>>, vector<128x16xbf16>
    %cst = arith.constant dense<0.000000e+00> : vector<128x128xf32>
    %3 = tpu.matmul %2, %1, %cst {dimension_numbers = #tpu.dot_dimension_numbers<[1], [0], [0], [1], [0, 0, 1, 1], [], []>} : vector<128x16xbf16>, vector<16x128xbf16>, vector<128x128xf32> -> vector<128x128xf32>
    %c0_3 = arith.constant 0 : index
    %c0_4 = arith.constant 0 : index
    %4 = vector.load %arg3[%c0_3, %c0_4] : memref<128x1xf32, #tpu.memory_space<vmem>>, vector<128x1xf32>
    %5 = vector.broadcast %4 : vector<128x1xf32> to vector<128x128xf32>
    %6 = arith.addf %3, %5 : vector<128x128xf32>
    %cst_5 = arith.constant 0.000000e+00 : f32
    %7 = vector.broadcast %cst_5 : f32 to vector<128x128xf32>
    %8 = arith.maximumf %6, %7 : vector<128x128xf32>
    %9 = arith.truncf %8 : vector<128x128xf32> to vector<128x128xbf16>
    %c0_6 = arith.constant 0 : index
    %c0_7 = arith.constant 0 : index
    %10 = vector.load %arg4[%c0_6, %c0_7] : memref<128x128xbf16, #tpu.memory_space<vmem>>, vector<128x128xbf16>
    %cst_8 = arith.constant dense<0.000000e+00> : vector<128x128xf32>
    %11 = tpu.matmul %10, %9, %cst_8 {dimension_numbers = #tpu.dot_dimension_numbers<[1], [0], [0], [1], [0, 0, 1, 1], [], []>} : vector<128x128xbf16>, vector<128x128xbf16>, vector<128x128xf32> -> vector<128x128xf32>
    %c0_9 = arith.constant 0 : index
    %c0_10 = arith.constant 0 : index
    %12 = vector.load %arg5[%c0_9, %c0_10] : memref<128x1xf32, #tpu.memory_space<vmem>>, vector<128x1xf32>
    %13 = vector.broadcast %12 : vector<128x1xf32> to vector<128x128xf32>
    %14 = arith.addf %11, %13 : vector<128x128xf32>
    %cst_11 = arith.constant 0.000000e+00 : f32
    %15 = vector.broadcast %cst_11 : f32 to vector<128x128xf32>
    %16 = arith.maximumf %14, %15 : vector<128x128xf32>
    %17 = arith.truncf %16 : vector<128x128xf32> to vector<128x128xbf16>
    %c0_12 = arith.constant 0 : index
    %c0_13 = arith.constant 0 : index
    %18 = vector.load %arg6[%c0_12, %c0_13] : memref<3x128xbf16, #tpu.memory_space<vmem>>, vector<3x128xbf16>
    %cst_14 = arith.constant dense<0.000000e+00> : vector<3x128xf32>
    %19 = tpu.matmul %18, %17, %cst_14 {dimension_numbers = #tpu.dot_dimension_numbers<[1], [0], [0], [1], [0, 0, 1, 1], [], []>} : vector<3x128xbf16>, vector<128x128xbf16>, vector<3x128xf32> -> vector<3x128xf32>
    %c0_15 = arith.constant 0 : index
    %c0_16 = arith.constant 0 : index
    %20 = vector.load %arg7[%c0_15, %c0_16] : memref<3x1xf32, #tpu.memory_space<vmem>>, vector<3x1xf32>
    %21 = vector.broadcast %20 : vector<3x1xf32> to vector<3x128xf32>
    %22 = arith.addf %19, %21 : vector<3x128xf32>
    %c0_17 = arith.constant 0 : index
    %c0_18 = arith.constant 0 : index
    %23 = vector.load %arg8[%c0_17, %c0_18] : memref<3x128xf32, #tpu.memory_space<vmem>>, vector<3x128xf32>
    tpu.vector_store %arg8[%c0_17, %c0_18], %22 {strides = array<i32>} : memref<3x128xf32, #tpu.memory_space<vmem>>, vector<3x128xf32>,
    return
  }
  func.func @transform_0(%arg0: i32) -> (i32, i32) {
    %c0_i32 = arith.constant 0 : i32
    %c0_i32_0 = arith.constant 0 : i32
    return %c0_i32, %arg0 : i32, i32
  }
  func.func @transform_1(%arg0: i32) -> (i32, i32) {
    %c0_i32 = arith.constant 0 : i32
    %c0_i32_0 = arith.constant 0 : i32
    %c0_i32_1 = arith.constant 0 : i32
    return %c0_i32, %c0_i32_0 : i32, i32
  }
  func.func @transform_2(%arg0: i32) -> (i32, i32) {
    %c0_i32 = arith.constant 0 : i32
    %c0_i32_0 = arith.constant 0 : i32
    %c0_i32_1 = arith.constant 0 : i32
    return %c0_i32, %c0_i32_0 : i32, i32
  }
  func.func @transform_3(%arg0: i32) -> (i32, i32) {
    %c0_i32 = arith.constant 0 : i32
    %c0_i32_0 = arith.constant 0 : i32
    %c0_i32_1 = arith.constant 0 : i32
    return %c0_i32, %c0_i32_0 : i32, i32
  }
  func.func @transform_4(%arg0: i32) -> (i32, i32) {
    %c0_i32 = arith.constant 0 : i32
    %c0_i32_0 = arith.constant 0 : i32
    %c0_i32_1 = arith.constant 0 : i32
    return %c0_i32, %c0_i32_0 : i32, i32
  }
  func.func @transform_5(%arg0: i32) -> (i32, i32) {
    %c0_i32 = arith.constant 0 : i32
    %c0_i32_0 = arith.constant 0 : i32
    %c0_i32_1 = arith.constant 0 : i32
    return %c0_i32, %c0_i32_0 : i32, i32
  }
  func.func @transform_6(%arg0: i32) -> (i32, i32) {
    %c0_i32 = arith.constant 0 : i32
    %c0_i32_0 = arith.constant 0 : i32
    %c0_i32_1 = arith.constant 0 : i32
    return %c0_i32, %c0_i32_0 : i32, i32
  }
  func.func @transform_7(%arg0: i32) -> (i32, i32) {
    %c0_i32 = arith.constant 0 : i32
    %c0_i32_0 = arith.constant 0 : i32
    return %c0_i32, %arg0 : i32, i32
  }
}

</mosaic_0001>

<bundles_post_ra>
// kernel: generator_forward.1
= control target key start
LH: loop header
LB: loop body
LE: loop exit
PB: predicated region body
PF: predicated region fallthrough
CT: control target
= control target key end

     0   :  { %vm182_vm0 = vcmask 130048   ;;  %v810_v2 = vmov 0   ;;  %vm812_vm1 = vmmov 0   ;;  %s1047_s0 = inlined_call_operand.vmem [shape: f32[16,128], index: 0, kind: input, shape index: {}]   ;;  %s1048_s1 = inlined_call_operand.vmem [shape: bf16[128,16], index: 1, kind: input, shape index: {}]   ;;  %s1049_s2 = inlined_call_operand.vmem [shape: f32[128,1], index: 2, kind: input, shape index: {}]   ;;  %s1050_s4 = inlined_call_operand.vmem [shape: f32[128,1], index: 4, kind: input, shape index: {}]   ;;  %s1051_s6 = inlined_call_operand.vmem [shape: f32[3,1], index: 6, kind: input, shape index: {}]   ;;  %s1052_s3 = inlined_call_operand.vmem [shape: bf16[128,128], index: 3, kind: input, shape index: {}]   ;;  %s1053_s5 = inlined_call_operand.vmem [shape: bf16[3,128], index: 5, kind: input, shape index: {}]   ;;  %s1054_s7 = inlined_call_operand.vmem [shape: f32[3,128], index: 7, kind: output, shape index: {}]  }
   0x1   :  { %v27_v0 = vld [vmem:[%s1047_s0] sm:$0xff]  ;;  %v28_v1 = vld [vmem:[%s1047_s0 + $0x8] sm:$0xff]  ;;  %792 = vset.pattern.permute.xlu0 %v810_v2  ;;  %793 = vset.pattern.permute.xlu1 %v810_v2  ;;  %v796_v6 = vld [vmem:[%s1048_s1 + $0x10] sm:$0xff]  }
   0x2   :  { %v29_v3 = vpack.c.bf16 %v28_v1, %v27_v0  ;;  %v794_v4 = vld [vmem:[%s1048_s1] sm:$0xff]   ;;  %v795_v5 = vld [vmem:[%s1048_s1 + $0x8] sm:$0xff]   ;;  %v60_v7 = vld [vmem:[%s1049_s2 + $0x70] sm:$0xff] }
   0x3   :  { %721 = vmatprep.mubr.msk.bf16.mxu0 %vm182_vm0, %v794_v4  ;;  %134 = vperm.xlu0 %792, %v60_v7   ;;  %v58_v8 = vld [vmem:[%s1049_s2 + $0x60] sm:$0xff]  ;;  %v61_v9 = vld [vmem:[%s1049_s2 + $0x78] sm:$0xff]  ;;  %v59_v11 = vld [vmem:[%s1049_s2 + $0x68] sm:$0xff] }
   0x4   :  { %719 = vmatprep.subr.bf16.mxu0 %v29_v3  ;;  %124 = vperm.xlu1 %793, %v58_v8   ;;  %v797_v10 = vld [vmem:[%s1048_s1 + $0x18] sm:$0xff]   ;;  %v798_v12 = vld [vmem:[%s1048_s1 + $0x20] sm:$0xff]   ;;  %v56_v13 = vld [vmem:[%s1049_s2 + $0x50] sm:$0xff] }
   0x5   :  { %720 = vmatpush3.bf16.msra.mxu0 %v29_v3  ;;  %v57_v14 = vld [vmem:[%s1049_s2 + $0x58] sm:$0xff]  ;;  %v54_v15 = vld [vmem:[%s1049_s2 + $0x40] sm:$0xff]  ;;  %v799_v16 = vld [vmem:[%s1048_s1 + $0x28] sm:$0xff]  }
   0x6   :  { %v55_v17 = vld [vmem:[%s1049_s2 + $0x48] sm:$0xff]  ;;  %v800_v18 = vld [vmem:[%s1048_s1 + $0x30] sm:$0xff]   ;;  %v53_v20 = vld [vmem:[%s1049_s2 + $0x38] sm:$0xff] }
   0x7   :  { %139 = vperm.xlu0 %792, %v61_v9   ;;  %v52_v19 = vld [vmem:[%s1049_s2 + $0x30] sm:$0xff]  ;;  %v50_v21 = vld [vmem:[%s1049_s2 + $0x20] sm:$0xff]  ;;  %v801_v22 = vld [vmem:[%s1048_s1 + $0x38] sm:$0xff]  }
   0x8   :  { %722 = vmatmul.mubr.msk.bf16.vlgmr.msra.gmra.mxu0 %vm182_vm0, %v795_v5  ;;  %129 = vperm.xlu1 %793, %v59_v11   ;;  %v51_v23 = vld [vmem:[%s1049_s2 + $0x28] sm:$0xff]  ;;  %v48_v24 = vld [vmem:[%s1049_s2 + $0x10] sm:$0xff]  ;;  %v49_v25 = vld [vmem:[%s1049_s2 + $0x18] sm:$0xff] }
   0x9   :  { %725 = vmatprep.mubr.msk.bf16.mxu0 %vm182_vm0, %v796_v6  ;;  %v46_v26 = vld [vmem:[%s1049_s2] sm:$0xff]  ;;  %v47_v27 = vld [vmem:[%s1049_s2 + $0x8] sm:$0xff]  ;;  %v358_v28 = vld [vmem:[%s1050_s4 + $0x70] sm:$0xff] }
   0xa   :  { %v359_v29 = vld [vmem:[%s1050_s4 + $0x78] sm:$0xff]  ;;  %v356_v30 = vld [vmem:[%s1050_s4 + $0x60] sm:$0xff]  ;;  %v357_v31 = vld [vmem:[%s1050_s4 + $0x68] sm:$0xff] }
   0xb   :  { %114 = vperm.xlu0 %792, %v56_v13   ;;  %v354_v32 = vld [vmem:[%s1050_s4 + $0x50] sm:$0xff]  ;;  %v355_v33 = vld [vmem:[%s1050_s4 + $0x58] sm:$0xff]  ;;  %v352_v34 = vld [vmem:[%s1050_s4 + $0x40] sm:$0xff] }
   0xc   :  { %119 = vperm.xlu1 %793, %v57_v14   ;;  %v353_v35 = vld [vmem:[%s1050_s4 + $0x48] sm:$0xff]  ;;  %v350_v36 = vld [vmem:[%s1050_s4 + $0x30] sm:$0xff]  ;;  %v351_v37 = vld [vmem:[%s1050_s4 + $0x38] sm:$0xff] }
   0xd   :  { %v348_v38 = vld [vmem:[%s1050_s4 + $0x20] sm:$0xff]  ;;  %v349_v39 = vld [vmem:[%s1050_s4 + $0x28] sm:$0xff]  ;;  %v346_v40 = vld [vmem:[%s1050_s4 + $0x10] sm:$0xff] }
   0xe   :  { %v347_v41 = vld [vmem:[%s1050_s4 + $0x18] sm:$0xff]  ;;  %v344_v42 = vld [vmem:[%s1050_s4] sm:$0xff]  ;;  %v345_v43 = vld [vmem:[%s1050_s4 + $0x8] sm:$0xff] }
   0xf   :  { %104 = vperm.xlu0 %792, %v54_v15   ;;  %v610_v44 = vld [vmem:[%s1051_s6] sm:$0x7] }
  0x10   :  { %726 = vmatmul.mubr.msk.bf16.gmra.mxu0 %vm182_vm0, %v797_v10  ;;  %109 = vperm.xlu1 %793, %v55_v17   ;;  %v802_v45 = vld [vmem:[%s1052_s3] sm:$0xff]  }
  0x11   :  { %729 = vmatprep.mubr.msk.bf16.mxu0 %vm182_vm0, %v798_v12  ;;  %753 = vmatprep.mubr.bf16.mxu1 %v802_v45 }
  0x13   :  { %94 = vperm.xlu0 %792, %v52_v19  }
  0x14   :  { %99 = vperm.xlu1 %793, %v53_v20  }
  0x17   :  { %84 = vperm.xlu0 %792, %v50_v21  }
  0x18   :  { %730 = vmatmul.mubr.msk.bf16.gmra.mxu0 %vm182_vm0, %v799_v16  ;;  %89 = vperm.xlu1 %793, %v51_v23  }
  0x19   :  { %733 = vmatprep.mubr.msk.bf16.mxu0 %vm182_vm0, %v800_v18 }
  0x1b   :  { %74 = vperm.xlu0 %792, %v48_v24  }
  0x1c   :  { %79 = vperm.xlu1 %793, %v49_v25  }
  0x1f   :  { %64 = vperm.xlu0 %792, %v46_v26  }
  0x20   :  { %734 = vmatmul.mubr.msk.bf16.gmra.mxu0 %vm182_vm0, %v801_v22  ;;  %69 = vperm.xlu1 %793, %v47_v27  }
  0x23   :  { %432 = vperm.xlu0 %792, %v358_v28  }
  0x24   :  { %437 = vperm.xlu1 %793, %v359_v29  }
  0x27   :  { %422 = vperm.xlu0 %792, %v356_v30  }
  0x28   :  { %427 = vperm.xlu1 %793, %v357_v31  }
  0x2b   :  { %412 = vperm.xlu0 %792, %v354_v32  }
  0x2c   :  { %417 = vperm.xlu1 %793, %v355_v33  }
  0x2f   :  { %402 = vperm.xlu0 %792, %v352_v34  }
  0x30   :  { %407 = vperm.xlu1 %793, %v353_v35  }
  0x33   :  { %392 = vperm.xlu0 %792, %v350_v36  }
  0x34   :  { %397 = vperm.xlu1 %793, %v351_v37  }
  0x37   :  { %382 = vperm.xlu0 %792, %v348_v38  }
  0x38   :  { %387 = vperm.xlu1 %793, %v349_v39  }
  0x3b   :  { %372 = vperm.xlu0 %792, %v346_v40  }
  0x3c   :  { %377 = vperm.xlu1 %793, %v347_v41  }
  0x3f   :  { %362 = vperm.xlu0 %792, %v344_v42  }
  0x40   :  { %367 = vperm.xlu1 %793, %v345_v43  }
  0x43   :  { %613 = vperm.xlu0 %792, %v610_v44  }
  0x7e   :  { %v135_v52 = vpop.permute.xlu0 %134 }
  0x7f   :  { %v125_v50 = vpop.permute.xlu1 %124 }
  0x82   :  { %v140_v57 = vpop.permute.xlu0 %139 }
  0x83   :  { %v130_v55 = vpop.permute.xlu1 %129 }
  0x86   :  { %v115_v62 = vpop.permute.xlu0 %114 }
  0x87   :  { %v120_v60 = vpop.permute.xlu1 %119 }
  0x8a   :  { %v105_v4 = vpop.permute.xlu0 %104 }
  0x8b   :  { %v110_v1 = vpop.permute.xlu1 %109 }
  0x8e   :  { %v95_v18 = vpop.permute.xlu0 %94 }
  0x8f   :  { %v100_v13 = vpop.permute.xlu1 %99 }
  0x92   :  { %v85_v28 = vpop.permute.xlu0 %84 }
  0x93   :  { %v90_v24 = vpop.permute.xlu1 %89 }
  0x96   :  { %v75_v37 = vpop.permute.xlu0 %74 }
  0x97   :  { %v80_v34 = vpop.permute.xlu1 %79 }
  0x9b   :  { %v70_v43 = vpop.permute.xlu1 %69 }
  0xc8   :  { %v993_v46 = vpop.f32.mrf.mxu0 }
  0xc9   :  { %v250_v41 = vadd.f32 %v993_v46, %v75_v37  ;;  %v803_v46 = vld [vmem:[%s1052_s3 + $0x8] sm:$0xff]  }
  0xca   :  { %v995_v47 = vpop.f32.mrf.mxu0 }
  0xcc   :  { %v724_v48 = vpop.f32.mrf.mxu0 }
  0xcd   :  { %v253_v38 = vadd.f32 %v724_v48, %v80_v34 }
  0xce   :  { %v997_v49 = vpop.f32.mrf.mxu0 }
  0xcf   :  { %v307_v44 = vmax.f32 %v253_v38, 0.0  ;;  %v245_v45 = vadd.f32 %v997_v49, %v70_v43  ;;  %v804_v49 = vld [vmem:[%s1052_s3 + $0x10] sm:$0xff]  }
  0xd0   :  { %v727_v51 = vpop.f32.mrf.mxu0 }
  0xd1   :  { %v266_v29 = vadd.f32 %v727_v51, %v95_v18  ;;  %v65_v51 = vpop.permute.xlu0 %64  ;;  %v305_v48 = vmax.f32 %v245_v45, 0.0 }
  0xd2   :  { %v257_v53 = vpop.f32.mrf.mxu0 }
  0xd3   :  { %v310_v35 = vmax.f32 %v266_v29, 0.0  ;;  %v258_v36 = vadd.f32 %v257_v53, %v85_v28  ;;  %v242_v53 = vadd.f32 %v995_v47, %v65_v51  ;;  %v805_v47 = vld [vmem:[%s1052_s3 + $0x18] sm:$0xff]  }
  0xd4   :  { %v728_v54 = vpop.f32.mrf.mxu0 }
  0xd5   :  { %v269_v25 = vadd.f32 %v728_v54, %v100_v13  ;;  %v308_v42 = vmax.f32 %v258_v36, 0.0 }
  0xd6   :  { %v260_v56 = vpop.f32.mrf.mxu0 }
  0xd7   :  { %v311_v31 = vmax.f32 %v269_v25, 0.0  ;;  %v261_v32 = vadd.f32 %v260_v56, %v90_v24 }
  0xd8   :  { %v731_v58 = vpop.f32.mrf.mxu0 }
  0xd9   :  { %v282_v14 = vadd.f32 %v731_v58, %v115_v62  ;;  %v323_v39 = vpack.c.bf16 %v311_v31, %v310_v35  ;;  %v309_v40 = vmax.f32 %v261_v32, 0.0  ;;  %v807_v58 = vld [vmem:[%s1052_s3 + $0x28] sm:$0xff]  }
  0xda   :  { %v273_v59 = vpop.f32.mrf.mxu0 }
  0xdb   :  { %v314_v22 = vmax.f32 %v282_v14, 0.0  ;;  %v274_v23 = vadd.f32 %v273_v59, %v105_v4  ;;  %v808_v59 = vld [vmem:[%s1052_s3 + $0x30] sm:$0xff]  }
  0xdc   :  { %v732_v61 = vpop.f32.mrf.mxu0 }
  0xdd   :  { %v285_v9 = vadd.f32 %v732_v61, %v120_v60  ;;  %v312_v30 = vmax.f32 %v274_v23, 0.0  ;;  %v809_v60 = vld [vmem:[%s1052_s3 + $0x38] sm:$0xff]   ;;  %v811_v61 = vmov 0.0  }
  0xde   :  { %v276_v63 = vpop.f32.mrf.mxu0  ;;  %769 = vmatprep.subr.bf16.mxu0 %v811_v61  ;;  %785 = vmatprep.mubr.msk.bf16.mxu0 %vm812_vm1, %v811_v61 }
  0xdf   :  { %v315_v19 = vmax.f32 %v285_v9, 0.0  ;;  %v277_v20 = vadd.f32 %v276_v63, %v110_v1 }
  0xe0   :  { %v735_v0 = vpop.f32.mrf.mxu0 }
  0xe1   :  { %v298_v3 = vadd.f32 %v735_v0, %v135_v52  ;;  %v325_v26 = vpack.c.bf16 %v315_v19, %v314_v22  ;;  %v313_v27 = vmax.f32 %v277_v20, 0.0  ;;  %v306_v52 = vmax.f32 %v250_v41, 0.0 }
  0xe2   :  { %v289_v2 = vpop.f32.mrf.mxu0 }
  0xe3   :  { %v290_v6 = vadd.f32 %v289_v2, %v125_v50  ;;  %v318_v10 = vmax.f32 %v298_v3, 0.0  ;;  %v324_v33 = vpack.c.bf16 %v313_v27, %v312_v30  ;;  %v322_v50 = vpack.c.bf16 %v309_v40, %v308_v42  ;;  %v438_v3 = vpop.permute.xlu1 %437 }
  0xe4   :  { %v736_v5 = vpop.f32.mrf.mxu0  ;;  %v321_v54 = vpack.c.bf16 %v307_v44, %v306_v52 }
  0xe5   :  { %v301_v7 = vadd.f32 %v736_v5, %v140_v57  ;;  %v316_v15 = vmax.f32 %v290_v6, 0.0  ;;  %v806_v57 = vld [vmem:[%s1052_s3 + $0x20] sm:$0xff]   ;;  %v433_v5 = vpop.permute.xlu0 %432 }
  0xe6   :  { %v292_v8 = vpop.f32.mrf.mxu0 }
  0xe7   :  { %v319_v11 = vmax.f32 %v301_v7, 0.0  ;;  %v293_v12 = vadd.f32 %v292_v8, %v130_v55  ;;  %v304_v55 = vmax.f32 %v242_v53, 0.0  ;;  %v428_v8 = vpop.permute.xlu1 %427 }
  0xe9   :  { %v317_v16 = vmax.f32 %v293_v12, 0.0  ;;  %v327_v17 = vpack.c.bf16 %v319_v11, %v318_v10  ;;  %v320_v56 = vpack.c.bf16 %v305_v48, %v304_v55  ;;  %v423_v10 = vpop.permute.xlu0 %422 }
  0xeb   :  { %v326_v21 = vpack.c.bf16 %v317_v16, %v316_v15  ;;  %737 = vmatprep.subr.bf16.mxu1 %v327_v17  ;;  %v418_v13 = vpop.permute.xlu1 %417 }
  0xec   :  { %738 = vmatpush3.bf16.msra.mxu1 %v327_v17 }
  0xed   :  { %739 = vmatprep.subr.bf16.mxu1 %v326_v21  ;;  %v413_v15 = vpop.permute.xlu0 %412 }
  0xef   :  { %v408_v19 = vpop.permute.xlu1 %407 }
  0xf0   :  { %740 = vmatpush3.bf16.msra.mxu1 %v326_v21 }
  0xf1   :  { %741 = vmatprep.subr.bf16.mxu1 %v325_v26  ;;  %v403_v22 = vpop.permute.xlu0 %402 }
  0xf3   :  { %v398_v31 = vpop.permute.xlu1 %397 }
  0xf4   :  { %742 = vmatpush3.bf16.msra.mxu1 %v325_v26 }
  0xf5   :  { %743 = vmatprep.subr.bf16.mxu1 %v324_v33  ;;  %v393_v34 = vpop.permute.xlu0 %392 }
  0xf7   :  { %v388_v40 = vpop.permute.xlu1 %387 }
  0xf8   :  { %744 = vmatpush3.bf16.msra.mxu1 %v324_v33 }
  0xf9   :  { %745 = vmatprep.subr.bf16.mxu1 %v323_v39  ;;  %v383_v44 = vpop.permute.xlu0 %382 }
  0xfc   :  { %746 = vmatpush3.bf16.msra.mxu1 %v323_v39 }
  0xfd   :  { %747 = vmatprep.subr.bf16.mxu1 %v322_v50 }
 0x100   :  { %748 = vmatpush3.bf16.msra.mxu1 %v322_v50 }
 0x101   :  { %749 = vmatprep.subr.bf16.mxu1 %v321_v54 }
 0x104   :  { %750 = vmatpush3.bf16.msra.mxu1 %v321_v54  ;;  %v378_v54 = vpop.permute.xlu1 %377 }
 0x105   :  { %751 = vmatprep.subr.bf16.mxu1 %v320_v56 }
 0x108   :  { %752 = vmatpush3.bf16.msra.mxu1 %v320_v56  ;;  %v373_v56 = vpop.permute.xlu0 %372 }
 0x10b   :  { %754 = vmatmul.mubr.bf16.vlgmr.msra.gmra.mxu1 %v803_v46 }
 0x10c   :  { %757 = vmatprep.mubr.bf16.mxu1 %v804_v49 }
 0x113   :  { %758 = vmatmul.mubr.bf16.gmra.mxu1 %v805_v47 }
 0x114   :  { %761 = vmatprep.mubr.bf16.mxu1 %v806_v57 }
 0x11b   :  { %762 = vmatmul.mubr.bf16.gmra.mxu1 %v807_v58 }
 0x11c   :  { %765 = vmatprep.mubr.bf16.mxu1 %v808_v59  ;;  %v368_v59 = vpop.permute.xlu1 %367 }
 0x123   :  { %766 = vmatmul.mubr.bf16.gmra.mxu1 %v809_v60 }
 0x1cb   :  { %v1025_v62 = vpop.f32.mrf.mxu1 }
 0x1cc   :  { %v531_v57 = vadd.f32 %v1025_v62, %v373_v56 }
 0x1cd   :  { %v1027_v63 = vpop.f32.mrf.mxu1 }
 0x1cf   :  { %v756_v0 = vpop.f32.mrf.mxu1 }
 0x1d0   :  { %v534_v46 = vadd.f32 %v756_v0, %v378_v54 }
 0x1d1   :  { %v1029_v1 = vpop.f32.mrf.mxu1 }
 0x1d2   :  { %v588_v60 = vmax.f32 %v534_v46, 0.0 }
 0x1d3   :  { %v759_v2 = vpop.f32.mrf.mxu1 }
 0x1d4   :  { %v547_v45 = vadd.f32 %v759_v2, %v393_v34  ;;  %v526_v2 = vadd.f32 %v1029_v1, %v368_v59  ;;  %v609_v1 = vld [vmem:[%s1053_s5] sm:$0x3] }
 0x1d5   :  { %v538_v4 = vpop.f32.mrf.mxu1 }
 0x1d6   :  { %v591_v48 = vmax.f32 %v547_v45, 0.0  ;;  %v539_v55 = vadd.f32 %v538_v4, %v383_v44  ;;  %v587_v4 = vmax.f32 %v531_v57, 0.0 }
 0x1d7   :  { %v760_v6 = vpop.f32.mrf.mxu1 }
 0x1d8   :  { %v550_v41 = vadd.f32 %v760_v6, %v398_v31  ;;  %v589_v58 = vmax.f32 %v539_v55, 0.0  ;;  %v602_v0 = vpack.c.bf16 %v588_v60, %v587_v4 }
 0x1d9   :  { %v541_v7 = vpop.f32.mrf.mxu1 }
 0x1da   :  { %v592_v51 = vmax.f32 %v550_v41, 0.0  ;;  %v542_v52 = vadd.f32 %v541_v7, %v388_v40  ;;  %v586_v7 = vmax.f32 %v526_v2, 0.0 }
 0x1db   :  { %v763_v9 = vpop.f32.mrf.mxu1 }
 0x1dc   :  { %v563_v32 = vadd.f32 %v763_v9, %v413_v15  ;;  %v604_v49 = vpack.c.bf16 %v592_v51, %v591_v48  ;;  %v590_v47 = vmax.f32 %v542_v52, 0.0 }
 0x1dd   :  { %v554_v11 = vpop.f32.mrf.mxu1 }
 0x1de   :  { %v595_v38 = vmax.f32 %v563_v32, 0.0  ;;  %v555_v39 = vadd.f32 %v554_v11, %v403_v22 }
 0x1df   :  { %v764_v12 = vpop.f32.mrf.mxu1 }
 0x1e0   :  { %v566_v28 = vadd.f32 %v764_v12, %v418_v13  ;;  %v593_v50 = vmax.f32 %v555_v39, 0.0 }
 0x1e1   :  { %v557_v14 = vpop.f32.mrf.mxu1 }
 0x1e2   :  { %v596_v35 = vmax.f32 %v566_v28, 0.0  ;;  %v558_v36 = vadd.f32 %v557_v14, %v408_v19 }
 0x1e3   :  { %v767_v16 = vpop.f32.mrf.mxu1 }
 0x1e4   :  { %v579_v18 = vadd.f32 %v767_v16, %v433_v5  ;;  %v606_v42 = vpack.c.bf16 %v596_v35, %v595_v38  ;;  %v594_v43 = vmax.f32 %v558_v36, 0.0  ;;  %v363_v5 = vpop.permute.xlu0 %362 }
 0x1e5   :  { %v570_v17 = vpop.f32.mrf.mxu1  ;;  %v523_v6 = vadd.f32 %v1027_v63, %v363_v5 }
 0x1e6   :  { %v599_v24 = vmax.f32 %v579_v18, 0.0  ;;  %v571_v25 = vadd.f32 %v570_v17, %v423_v10  ;;  %v605_v53 = vpack.c.bf16 %v594_v43, %v593_v50 }
 0x1e7   :  { %v768_v20 = vpop.f32.mrf.mxu1 }
 0x1e8   :  { %v582_v21 = vadd.f32 %v768_v20, %v438_v3  ;;  %v597_v33 = vmax.f32 %v571_v25, 0.0  ;;  %v603_v3 = vpack.c.bf16 %v590_v47, %v589_v58  ;;  %v614_v9 = vpop.permute.xlu0 %613 }
 0x1e9   :  { %v573_v23 = vpop.f32.mrf.mxu1 }
 0x1ea   :  { %v600_v26 = vmax.f32 %v582_v21, 0.0  ;;  %v574_v27 = vadd.f32 %v573_v23, %v428_v8  ;;  %v585_v8 = vmax.f32 %v523_v6, 0.0 }
 0x1ec   :  { %v608_v29 = vpack.c.bf16 %v600_v26, %v599_v24  ;;  %v598_v30 = vmax.f32 %v574_v27, 0.0  ;;  %v601_v62 = vpack.c.bf16 %v586_v7, %v585_v8 }
 0x1ee   :  { %770 = vmatpush3.bf16.msra.mxu0 %v608_v29  ;;  %v607_v37 = vpack.c.bf16 %v598_v30, %v597_v33 }
 0x1ef   :  { %771 = vmatprep.subr.bf16.mxu0 %v811_v61 }
 0x1f2   :  { %772 = vmatpush3.bf16.msra.mxu0 %v607_v37 }
 0x1f3   :  { %773 = vmatprep.subr.bf16.mxu0 %v811_v61 }
 0x1f6   :  { %774 = vmatpush3.bf16.msra.mxu0 %v606_v42 }
 0x1f7   :  { %775 = vmatprep.subr.bf16.mxu0 %v811_v61 }
 0x1fa   :  { %776 = vmatpush3.bf16.msra.mxu0 %v605_v53 }
 0x1fb   :  { %777 = vmatprep.subr.bf16.mxu0 %v811_v61 }
 0x1fe   :  { %778 = vmatpush3.bf16.msra.mxu0 %v604_v49 }
 0x1ff   :  { %779 = vmatprep.subr.bf16.mxu0 %v811_v61 }
 0x202   :  { %780 = vmatpush3.bf16.msra.mxu0 %v603_v3 }
 0x203   :  { %781 = vmatprep.subr.bf16.mxu0 %v811_v61 }
 0x206   :  { %782 = vmatpush3.bf16.msra.mxu0 %v602_v0 }
 0x207   :  { %783 = vmatprep.subr.bf16.mxu0 %v811_v61 }
 0x20a   :  { %784 = vmatpush3.bf16.msra.mxu0 %v601_v62 }
 0x20d   :  { %786 = vmatmul.mubr.bf16.vlgmr.msra.gmra.mxu0 %v609_v1 }
 0x2cd   :  { %v650_v10 = vpop.f32.mrf.mxu0 }
 0x2ce   :  { %v651_v11 = vadd.f32 %v650_v10, %v614_v9 }
 0x2cf   :  { %v787_v63 = vpop.f32.mrf.mxu0 }
 0x2d0   :  { %656 = vst [vmem:[%s1054_s7] sm:$0x7] %v651_v11 }
 0x2d1   :  { %v653_v12 = vpop.f32.mrf.mxu0 }
 0x2d3   :  { %v788_v13 = vpop.f32.mrf.mxu0 }

</bundles_post_ra>
